<compile_context>
chip_gen: v6e
topology: v6e:2x2x1
jax: 0.10.0
libtpu: 0.0.40
codegen_flags: <defaults>
</compile_context>

<pallas_src>
import functools

import numpy as np
import jax
import jax.numpy as jnp
from jax.experimental import pallas as pl
from jax.experimental.pallas import tpu as pltpu


_BLOCK_CAP_BYTES = 4 << 20   # target per-step xb input block (review: 4-8 MiB)
_VMEM_LIMIT_MIN = 32 << 20
_VMEM_LIMIT_MAX = 50 << 20   # v7x physical VMEM is 64 MiB / TensorCore -> headroom


def _ceil_to(v, m):
    return -(-v // m) * m


def _choose_tiles(batch_size, max_nodes, num_features, itemsize):
    """Pick padded dims (Bp, Mp, Fp) and graphs-per-grid-step Bt.

    Assumes a single graph's padded block (Mp * Fp) fits comfortably in VMEM;
    node-axis tiling for huge graphs is out of scope here.
    """
    m_align = 8 if itemsize >= 4 else 16        # sublane alignment (bf16 packs 2/row)
    Mp = max(_ceil_to(max_nodes, m_align), m_align)
    Fp = max(_ceil_to(num_features, 128), 128)  # lane-dense, unmasked vst
    B8 = max(_ceil_to(batch_size, 8), 8)
    per_graph = Mp * Fp * itemsize

    # Grow graphs-per-step until the input block reaches the cap: amortizes the
    # ~0.35us per-grid-step overhead to <10% of the block's DMA time.
    Bt = 8
    while Bt * 2 <= B8 and Bt * 2 * per_graph <= _BLOCK_CAP_BYTES:
        Bt *= 2
    # Don't let batch padding (empty graphs) add more than ~25% extra HBM traffic.
    while Bt > 8 and (_ceil_to(B8, Bt) - B8) * 4 > B8:
        Bt //= 2
    # Keep grid >= 2 when we can: v7x shards the "parallel" axis across its 2 TCs.
    if Bt > 8 and _ceil_to(B8, Bt) // Bt < 2:
        Bt //= 2
    Bp = _ceil_to(B8, Bt)
    return Bp, Mp, Fp, Bt


def global_self_attention_kernel(xb_ref, cnt_ref, o_ref, *, inv_feat):
    Bt, Mp, _ = xb_ref.shape

    # Rebuild the node mask from per-graph counts (removes the mask DMA stream).
    cnt = cnt_ref[...]                                               # [Bt, 1] int32
    node_id = jax.lax.broadcasted_iota(jnp.int32, (Bt, Mp), 1)
    mk = (node_id < cnt).astype(jnp.float32)                         # [Bt, Mp]

    # Upcast (inputs may be bf16) and mask, so padded rows need not be zero.
    xm = xb_ref[...].astype(jnp.float32) * mk[:, :, None]            # [Bt, Mp, Fp]

    # g_b = sum_i x_i ;  s_j = (g_b . x_j) / F  -- VPU broadcast-mul + reductions,
    # no MXU, no M x M matrix.
    g = jnp.sum(xm, axis=1)                                          # [Bt, Fp]
    s = jnp.sum(xm * g[:, None, :], axis=-1) * jnp.float32(inv_feat)  # [Bt, Mp]

    # Masked, numerically stable per-graph softmax; exact divide (kernel is
    # DMA-bound, approx reciprocal saved nothing).
    s = jnp.where(mk > 0, s, jnp.float32(-1e30))
    p = jnp.exp(s - jnp.max(s, axis=-1, keepdims=True)) * mk         # [Bt, Mp]
    denom = jnp.sum(p, axis=-1, keepdims=True)                       # [Bt, 1]
    alpha = p / jnp.where(denom > 0, denom, jnp.float32(1.0))        # empty-graph safe

    # TODO(synk): dropout(p=0.1) omitted -- inference/eval semantics.

    # out_b = sum_j alpha_j * x_j  -- broadcast-mul + sublane reduction.
    o_ref[...] = jnp.sum(alpha[:, :, None] * xm, axis=1)             # [Bt, Fp]


def global_self_attention(batch_x, counts, num_features, block_graphs):
    """batch_x: [Bp, Mp, Fp] (f32 or bf16), counts: [Bp, 1] int32 -> [Bp, Fp] f32."""
    Bp, Mp, Fp = batch_x.shape
    Bt = int(block_graphs)
    assert Bp % Bt == 0 and Bt % 8 == 0

    in_block = Bt * Mp * Fp * batch_x.dtype.itemsize
    f32_block = Bt * Mp * Fp * 4
    # 2x double-buffered input + masked f32 working copy + fused-product slack.
    vmem_limit = int(min(max(2 * in_block + 3 * f32_block + (4 << 20),
                             _VMEM_LIMIT_MIN), _VMEM_LIMIT_MAX))

    kernel = functools.partial(global_self_attention_kernel,
                               inv_feat=1.0 / float(num_features))
    return pl.pallas_call(
        kernel,
        out_shape=jax.ShapeDtypeStruct((Bp, Fp), jnp.float32),
        grid=(Bp // Bt,),
        in_specs=[
            pl.BlockSpec((Bt, Mp, Fp), lambda b: (b, 0, 0)),
            pl.BlockSpec((Bt, 1), lambda b: (b, 0)),
        ],
        out_specs=pl.BlockSpec((Bt, Fp), lambda b: (b, 0)),
        compiler_params=pltpu.CompilerParams(
            dimension_semantics=("parallel",),
            vmem_limit_bytes=vmem_limit),
    )(batch_x, counts)


def global_self_attention_forward(x, batch, size=None, *, in_dtype=jnp.bfloat16):
    """Full forward: dense-batch (PyG to_dense_batch style, padded to TPU-friendly
    shapes) + Pallas kernel + un-pad.  Assumes `batch` is sorted / contiguous per
    graph (same assumption as PyG)."""
    batch_np = np.asarray(batch)
    if size is None:
        size = int(batch_np[-1]) + 1
    max_nodes = int(np.max(np.bincount(batch_np, minlength=1)))
    N, F = x.shape
    itemsize = jnp.dtype(in_dtype).itemsize
    Bp, Mp, Fp, Bt = _choose_tiles(size, max_nodes, F, itemsize)

    counts = jnp.zeros((Bp,), jnp.int32).at[batch].add(1)
    starts = jnp.concatenate(
        [jnp.zeros((1,), jnp.int32), jnp.cumsum(counts)[:-1].astype(jnp.int32)])
    pos = jnp.arange(N, dtype=jnp.int32) - starts[batch]

    x_pad = jnp.pad(x.astype(jnp.float32), ((0, 0), (0, Fp - F))).astype(in_dtype)
    batch_x = jnp.zeros((Bp, Mp, Fp), in_dtype).at[batch, pos].set(x_pad)

    out_padded = global_self_attention(batch_x, counts.reshape(Bp, 1), F, Bt)
    return out_padded[:size, :F]


def reference(x, batch, batch_size):
    """Pure-JAX reference of the PyTorch forward (eval mode)."""
    F = x.shape[-1]
    g = jnp.zeros((batch_size, F), jnp.float32).at[batch].add(x)        # per-graph sum
    s = jnp.sum(x * g[batch], axis=-1) / jnp.float32(F)                 # per-node score
    smax = jnp.full((batch_size,), -jnp.inf, jnp.float32).at[batch].max(s)
    p = jnp.exp(s - smax[batch])
    denom = jnp.zeros((batch_size,), jnp.float32).at[batch].add(p)
    alpha = p / denom[batch]
    return jnp.zeros((batch_size, F), jnp.float32).at[batch].add(alpha[:, None] * x)


if __name__ == "__main__":
    key = jax.random.PRNGKey(0)

    # Small deterministic example: 15 nodes, 3 graphs (5 + 3 + 7 nodes), 32 features.
    F = 32
    batch_np = np.array([0] * 5 + [1] * 3 + [2] * 7, dtype=np.int32)
    N = batch_np.shape[0]
    B = int(batch_np.max()) + 1                 # size = batch[-1] + 1

    x = jax.random.normal(key, (N, F), dtype=jnp.float32)
    batch = jnp.asarray(batch_np)

    # Default (bf16 inputs: halves HBM traffic; kernel accumulates in f32).
    out_bf16 = jax.block_until_ready(global_self_attention_forward(x, batch))
    # f32 input path (also exercises the itemsize-dependent tiling).
    out_f32 = jax.block_until_ready(
        global_self_attention_forward(x, batch, in_dtype=jnp.float32))

    ref_f32 = reference(x, batch, B)
    x_q = x.astype(jnp.bfloat16).astype(jnp.float32)     # bf16-quantized inputs
    ref_bf16 = reference(x_q, batch, B)

    # Exact reciprocal + f32 accumulation => tight tolerances (vs 2e-3 previously).
    np.testing.assert_allclose(np.asarray(out_f32), np.asarray(ref_f32),
                               rtol=1e-4, atol=1e-5)
    np.testing.assert_allclose(np.asarray(out_bf16), np.asarray(ref_bf16),
                               rtol=1e-4, atol=1e-4)

    print("KERNEL_OK")
</pallas_src>

<mosaic_0001>
module attributes {stable_mosaic.version = 11 : i64} {
  func.func @global_self_attention_kernel(%arg0: i32, %arg1: memref<8x16x128xbf16, #tpu.memory_space<vmem>>, %arg2: memref<8x1xi32, #tpu.memory_space<vmem>>, %arg3: memref<8x128xf32, #tpu.memory_space<vmem>>) attributes {dimension_semantics = [#tpu.dimension_semantics<parallel>], iteration_bounds = array<i64: 1>, scalar_prefetch = 0 : i64, scratch_operands = 0 : i64, tpu.core_type = #tpu.core_type<tc>, window_params = [{transform_indices = @transform_0, window_bounds = array<i64: 8, 16, 128>}, {transform_indices = @transform_1, window_bounds = array<i64: 8, 1>}, {transform_indices = @transform_2, window_bounds = array<i64: 8, 128>}]} {
    %c0 = arith.constant 0 : index
    %c0_0 = arith.constant 0 : index
    %0 = vector.load %arg2[%c0, %c0_0] : memref<8x1xi32, #tpu.memory_space<vmem>>, vector<8x1xi32>
    %1 = tpu.iota {dimensions = array<i32: 1>} : vector<8x16xi32>
    %2 = vector.broadcast %0 : vector<8x1xi32> to vector<8x16xi32>
    %3 = arith.cmpi slt, %1, %2 : vector<8x16xi32>
    %4 = arith.extui %3 : vector<8x16xi1> to vector<8x16xi32>
    %5 = arith.sitofp %4 : vector<8x16xi32> to vector<8x16xf32>
    %c0_1 = arith.constant 0 : index
    %c0_2 = arith.constant 0 : index
    %c0_3 = arith.constant 0 : index
    %6 = vector.load %arg1[%c0_1, %c0_2, %c0_3] : memref<8x16x128xbf16, #tpu.memory_space<vmem>>, vector<8x16x128xbf16>
    %7 = arith.extf %6 : vector<8x16x128xbf16> to vector<8x16x128xf32>
    %8 = vector.shape_cast %5 : vector<8x16xf32> to vector<8x16x1xf32>
    %9 = vector.broadcast %8 : vector<8x16x1xf32> to vector<8x16x128xf32>
    %10 = arith.mulf %7, %9 : vector<8x16x128xf32>
    %cst = arith.constant dense<0.000000e+00> : vector<8x128xf32>
    %11 = vector.multi_reduction <add>, %10, %cst [1] : vector<8x16x128xf32> to vector<8x128xf32>
    %12 = vector.shape_cast %11 : vector<8x128xf32> to vector<8x1x128xf32>
    %13 = vector.broadcast %12 : vector<8x1x128xf32> to vector<8x16x128xf32>
    %14 = arith.mulf %10, %13 : vector<8x16x128xf32>
    %cst_4 = arith.constant dense<0.000000e+00> : vector<8x16xf32>
    %15 = vector.multi_reduction <add>, %14, %cst_4 [2] : vector<8x16x128xf32> to vector<8x16xf32>
    %cst_5 = arith.constant 3.125000e-02 : f32
    %16 = vector.broadcast %cst_5 : f32 to vector<8x16xf32>
    %17 = arith.mulf %15, %16 : vector<8x16xf32>
    %cst_6 = arith.constant 0.000000e+00 : f32
    %18 = vector.broadcast %cst_6 : f32 to vector<8x16xf32>
    %19 = arith.cmpf ogt, %5, %18 : vector<8x16xf32>
    %cst_7 = arith.constant -1.000000e+30 : f32
    %20 = vector.broadcast %cst_7 : f32 to vector<8x16xf32>
    %21 = arith.select %19, %17, %20 : vector<8x16xi1>, vector<8x16xf32>
    %cst_8 = arith.constant dense<0xFF800000> : vector<8xf32>
    %22 = vector.multi_reduction <maximumf>, %21, %cst_8 [1] : vector<8x16xf32> to vector<8xf32>
    %23 = vector.shape_cast %22 : vector<8xf32> to vector<8x1xf32>
    %24 = vector.broadcast %23 : vector<8x1xf32> to vector<8x16xf32>
    %25 = arith.subf %21, %24 : vector<8x16xf32>
    %26 = math.exp %25 : vector<8x16xf32>
    %27 = arith.mulf %26, %5 : vector<8x16xf32>
    %cst_9 = arith.constant dense<0.000000e+00> : vector<8xf32>
    %28 = vector.multi_reduction <add>, %27, %cst_9 [1] : vector<8x16xf32> to vector<8xf32>
    %29 = vector.shape_cast %28 : vector<8xf32> to vector<8x1xf32>
    %cst_10 = arith.constant 0.000000e+00 : f32
    %30 = vector.broadcast %cst_10 : f32 to vector<8x1xf32>
    %31 = arith.cmpf ogt, %29, %30 : vector<8x1xf32>
    %cst_11 = arith.constant 1.000000e+00 : f32
    %32 = vector.broadcast %cst_11 : f32 to vector<8x1xf32>
    %33 = arith.select %31, %29, %32 : vector<8x1xi1>, vector<8x1xf32>
    %34 = vector.broadcast %33 : vector<8x1xf32> to vector<8x16xf32>
    %35 = arith.divf %27, %34 : vector<8x16xf32>
    %36 = vector.shape_cast %35 : vector<8x16xf32> to vector<8x16x1xf32>
    %37 = vector.broadcast %36 : vector<8x16x1xf32> to vector<8x16x128xf32>
    %38 = arith.mulf %37, %10 : vector<8x16x128xf32>
    %cst_12 = arith.constant dense<0.000000e+00> : vector<8x128xf32>
    %39 = vector.multi_reduction <add>, %38, %cst_12 [1] : vector<8x16x128xf32> to vector<8x128xf32>
    %c0_13 = arith.constant 0 : index
    %c0_14 = arith.constant 0 : index
    %40 = vector.load %arg3[%c0_13, %c0_14] : memref<8x128xf32, #tpu.memory_space<vmem>>, vector<8x128xf32>
    tpu.vector_store %arg3[%c0_13, %c0_14], %39 {strides = array<i32>} : memref<8x128xf32, #tpu.memory_space<vmem>>, vector<8x128xf32>,
    return
  }
  func.func @transform_0(%arg0: i32) -> (i32, i32, i32) {
    %c0_i32 = arith.constant 0 : i32
    %c0_i32_0 = arith.constant 0 : i32
    %c0_i32_1 = arith.constant 0 : i32
    return %arg0, %c0_i32, %c0_i32_0 : i32, i32, i32
  }
  func.func @transform_1(%arg0: i32) -> (i32, i32) {
    %c0_i32 = arith.constant 0 : i32
    %c0_i32_0 = arith.constant 0 : i32
    return %arg0, %c0_i32 : i32, i32
  }
  func.func @transform_2(%arg0: i32) -> (i32, i32) {
    %c0_i32 = arith.constant 0 : i32
    %c0_i32_0 = arith.constant 0 : i32
    return %arg0, %c0_i32 : i32, i32
  }
}

</mosaic_0001>

<bundles_post_ra>
// kernel: tpu_custom_call.1
= control target key start
LH: loop header
LB: loop body
LE: loop exit
PB: predicated region body
PF: predicated region fallthrough
CT: control target
= control target key end

     0   :  { %7 = vsyncpa [#allocation3], 0  ;;  %s893_s0 = inlined_call_operand.hbm [shape: bf16[8,16,128], index: 0, kind: input, shape index: {}]   ;;  %s894_s1 = inlined_call_operand.vmem [shape: s32[8,1], index: 1, kind: input, shape index: {}]   ;;  %s895_s2 = inlined_call_operand.hbm [shape: f32[8,128], index: 2, kind: output, shape index: {}]  }
   0x1   :  { %8 = vsyncpa [#allocation4], 0  ;;  %s700_s9 = smov [#allocation2]  }
   0x2   :  { %s14_s10 = sshll.u32 %s700_s9, 4  ;;  %s15_s10 = int_to_ptr.vmem [resolvable:$true] %s14_s10 }
   0x3   :  { %s664_s11 = scalar_lea.vmem %s15_s10, 1024  ;;  %p669_p1 = scmp.lt.s32.totalorder %s15_s10, %s15_s10 }
   0x4   :  { %p665_p0 = scmp.ne.s32.totalorder %s15_s10, %s664_s11  ;;  %p670_p2 = scmp.lt.s32.totalorder %s664_s11, %s664_s11 }
   0x6   :  { %p671_p3 = por %p670_p2, %p669_p1 }
   0x8   :  { %p672_p4 = pnand %p671_p3, %p665_p0 }
   0xa   :  { %675 = shalt.err (!%p672_p4)
}
   0xb   :  { %s701_s12 = smov 64   ;;  %s702_s13 = smov 4  }
   0xc   :  { %20 = dma.hbm_to_vmem [thread:$0]  %s893_s0, 1024, %s15_s10, [#allocation3], %s701_s12, %s701_s12, %s702_s13  }
   0xd   :  { %696 = dma.done.wait [#allocation3], 1024  }
   0xe   :  { %697 = vsyncadd [#allocation3], 4294966272  ;;  %v703_v0 = vmov 0   ;;  %v26_v1 = vld [vmem:[%s894_s1] sm:$0xff]  ;;  %v27_v2 = vlaneseq  ;;  %v704_v7 = vmov 0.0   ;;  %v638_v27 = vld [vmem:[#allocation2 + $0x8] sm:$0xff]  }
   0xf   :  { %651 = vset.pattern.permute.xlu0 %v703_v0  ;;  %v607_v24 = vld [vmem:[#allocation2] sm:$0xff]   ;;  %v612_v32 = vunpack.c.l.bf16 %v638_v27  ;;  %v613_v33 = vunpack.c.h.bf16 %v638_v27  ;;  %v639_v34 = vld [vmem:[#allocation2 + $0x10] sm:$0xff]   ;;  %v640_v43 = vld [vmem:[#allocation2 + $0x18] sm:$0xff]   ;;  %vm317_vm1 = vcmask 130112   ;;  %vm382_vm2 = vcmask 1041409   ;;  %s705_s0 = smov [#allocation5]  }
  0x10   :  { %30 = vperm.xlu0 %651, %v26_v1   ;;  %v727_v3 = vshrl.u32 %v27_v2, 7  ;;  %v729_v4 = vand.u32 127, %v27_v2  ;;  %v609_v25 = vunpack.c.h.bf16 %v607_v24  ;;  %v608_v26 = vunpack.c.l.bf16 %v607_v24  ;;  %v641_v53 = vld [vmem:[#allocation2 + $0x20] sm:$0xff]   ;;  %v642_v2 = vld [vmem:[#allocation2 + $0x28] sm:$0xff]   ;;  %v643_v27 = vld [vmem:[#allocation2 + $0x30] sm:$0xff]   ;;  %s596_s1 = sshll.u32 %s705_s0, 4  ;;  %s597_s1 = int_to_ptr.vmem [resolvable:$true] %s596_s1 }
  0x11   :  { %v616_v38 = vunpack.c.l.bf16 %v639_v34  ;;  %v617_v42 = vunpack.c.h.bf16 %v639_v34  ;;  %v620_v48 = vunpack.c.l.bf16 %v640_v43  ;;  %v621_v49 = vunpack.c.h.bf16 %v640_v43  ;;  %s676_s18 = scalar_lea.vmem %s597_s1, 128  ;;  %p681_p6 = scmp.lt.s32.totalorder %s597_s1, %s597_s1 }
  0x12   :  { %v69_v5 = vsub.s32 0, %v727_v3  ;;  %v80_v10 = vsub.s32 1, %v727_v3  ;;  %v91_v12 = vsub.s32 2, %v727_v3  ;;  %v102_v14 = vsub.s32 3, %v727_v3  ;;  %p677_p5 = scmp.ne.s32.totalorder %s597_s1, %s676_s18  ;;  %p682_p7 = scmp.lt.s32.totalorder %s676_s18, %s676_s18 }
  0x13   :  { %v113_v16 = vsub.s32 4, %v727_v3  ;;  %v124_v18 = vsub.s32 5, %v727_v3  ;;  %v135_v20 = vsub.s32 6, %v727_v3  ;;  %v146_v22 = vsub.s32 7, %v727_v3 }
  0x14   :  { %v624_v60 = vunpack.c.l.bf16 %v641_v53  ;;  %v625_v61 = vunpack.c.h.bf16 %v641_v53  ;;  %vm384_vm3 = vcmask 1042434   ;;  %vm386_vm4 = vcmask 1043459   ;;  %p683_p8 = por %p682_p7, %p681_p6 }
  0x15   :  { %vm388_vm5 = vcmask 1044484   ;;  %vm390_vm6 = vcmask 1045509   ;;  %vm392_vm7 = vcmask 1046534   ;;  %vm394_vm8 = vcmask 1047559  }
  0x16   :  { %vm398_vm9 = vcmask 130048   ;;  %p684_p9 = pnand %p683_p8, %p677_p5 }
  0x8b   :  { %v31_v6 = vpop.permute.xlu0 %30 }
  0x8c   :  { %vm32_vm0 = vcmp.lt.s32.totalorder %v729_v4, %v31_v6 }
  0x8d   :  { %v733_v8 = vsel %vm32_vm0, 1.0, %v704_v7 }
  0x8e   :  { %v70_v9 = vrot.slane %v733_v8, %v69_v5  ;;  %v81_v11 = vrot.slane %v733_v8, %v80_v10  ;;  %v92_v13 = vrot.slane %v733_v8, %v91_v12  ;;  %v103_v15 = vrot.slane %v733_v8, %v102_v14 }
  0x8f   :  { %v114_v17 = vrot.slane %v733_v8, %v113_v16  ;;  %v125_v19 = vrot.slane %v733_v8, %v124_v18  ;;  %v136_v21 = vrot.slane %v733_v8, %v135_v20  ;;  %v147_v23 = vrot.slane %v733_v8, %v146_v22 }
  0x90   :  { %76 = vbcast.lane.b32.xlu1 %v70_v9, 264  ;;  %72 = vbcast.lane.b32.xlu0 %v70_v9, 256  ;;  %vm291_vm10 = vcmp.gt.f32.partialorder %v733_v8, 0.0 }
  0x94   :  { %83 = vbcast.lane.b32.xlu1 %v81_v11, 256  ;;  %87 = vbcast.lane.b32.xlu0 %v81_v11, 264 }
  0x98   :  { %94 = vbcast.lane.b32.xlu1 %v92_v13, 256  ;;  %98 = vbcast.lane.b32.xlu0 %v92_v13, 264 }
  0x9c   :  { %105 = vbcast.lane.b32.xlu1 %v103_v15, 256  ;;  %109 = vbcast.lane.b32.xlu0 %v103_v15, 264 }
  0xa0   :  { %116 = vbcast.lane.b32.xlu1 %v114_v17, 256  ;;  %120 = vbcast.lane.b32.xlu0 %v114_v17, 264  ;;  %v628_v17 = vunpack.c.l.bf16 %v642_v2 }
  0xa4   :  { %127 = vbcast.lane.b32.xlu1 %v125_v19, 256  ;;  %131 = vbcast.lane.b32.xlu0 %v125_v19, 264  ;;  %v629_v19 = vunpack.c.h.bf16 %v642_v2 }
  0xa8   :  { %138 = vbcast.lane.b32.xlu1 %v136_v21, 256  ;;  %142 = vbcast.lane.b32.xlu0 %v136_v21, 264 }
  0xac   :  { %149 = vbcast.lane.b32.xlu1 %v147_v23, 256  ;;  %153 = vbcast.lane.b32.xlu0 %v147_v23, 264 }
 0x102   :  { %v77_v28 = vpop.permute.xlu1 %76  ;;  %v73_v29 = vpop.permute.xlu0 %72 }
 0x103   :  { %v766_v30 = vmul.f32 %v609_v25, %v77_v28  ;;  %v768_v31 = vmul.f32 %v608_v26, %v73_v29 }
 0x105   :  { %v171_v35 = vadd.f32 %v766_v30, %v768_v31 }
 0x106   :  { %v84_v36 = vpop.permute.xlu1 %83  ;;  %v88_v37 = vpop.permute.xlu0 %87 }
 0x107   :  { %v172_v39 = vrot.slane %v171_v35, 4  ;;  %v772_v40 = vmul.f32 %v612_v32, %v84_v36  ;;  %v774_v41 = vmul.f32 %v613_v33, %v88_v37 }
 0x109   :  { %v173_v44 = vadd.f32 %v172_v39, %v171_v35  ;;  %v178_v45 = vadd.f32 %v774_v41, %v772_v40  ;;  %v633_v39 = vunpack.c.h.bf16 %v643_v27 }
 0x10a   :  { %v95_v46 = vpop.permute.xlu1 %94  ;;  %v99_v47 = vpop.permute.xlu0 %98 }
 0x10b   :  { %v179_v50 = vrot.slane %v178_v45, 4  ;;  %v778_v51 = vmul.f32 %v616_v38, %v95_v46  ;;  %v780_v52 = vmul.f32 %v617_v42, %v99_v47  ;;  %v174_v54 = vrot.slane %v173_v44, 2  ;;  %v644_v46 = vld [vmem:[#allocation2 + $0x38] sm:$0xff]  }
 0x10c   :  { %v632_v38 = vunpack.c.l.bf16 %v643_v27 }
 0x10d   :  { %v180_v55 = vadd.f32 %v179_v50, %v178_v45  ;;  %v185_v56 = vadd.f32 %v780_v52, %v778_v51  ;;  %v175_v57 = vadd.f32 %v174_v54, %v173_v44 }
 0x10e   :  { %v106_v58 = vpop.permute.xlu1 %105  ;;  %v110_v59 = vpop.permute.xlu0 %109 }
 0x10f   :  { %v186_v62 = vrot.slane %v185_v56, 4  ;;  %v784_v63 = vmul.f32 %v620_v48, %v106_v58  ;;  %v786_v0 = vmul.f32 %v621_v49, %v110_v59  ;;  %v176_v1 = vrot.slane %v175_v57, 1 }
 0x110   :  { %v181_v6 = vrot.slane %v180_v55, 2  ;;  %v636_v59 = vunpack.c.l.bf16 %v644_v46 }
 0x111   :  { %v187_v7 = vadd.f32 %v186_v62, %v185_v56  ;;  %v192_v9 = vadd.f32 %v786_v0, %v784_v63  ;;  %v177_v11 = vadd.f32 %v176_v1, %v175_v57 }
 0x112   :  { %v117_v13 = vpop.permute.xlu1 %116  ;;  %v121_v15 = vpop.permute.xlu0 %120  ;;  %v182_v21 = vadd.f32 %v181_v6, %v180_v55 }
 0x113   :  { %v193_v23 = vrot.slane %v192_v9, 4  ;;  %v790_v24 = vmul.f32 %v624_v60, %v117_v13  ;;  %v792_v25 = vmul.f32 %v625_v61, %v121_v15  ;;  %v228_v26 = vmul.f32 %v177_v11, %v766_v30 }
 0x114   :  { %v227_v28 = vmul.f32 %v177_v11, %v768_v31  ;;  %v183_v29 = vrot.slane %v182_v21, 1  ;;  %v188_v32 = vrot.slane %v187_v7, 2  ;;  %v637_v60 = vunpack.c.h.bf16 %v644_v46 }
 0x115   :  { %v194_v33 = vadd.f32 %v193_v23, %v192_v9  ;;  %v199_v34 = vadd.f32 %v792_v25, %v790_v24  ;;  %245 = vadd.xlane.f32.xlu0 %v228_v26 }
 0x116   :  { %243 = vadd.xlane.f32.xlu1 %v227_v28  ;;  %v128_v35 = vpop.permute.xlu1 %127  ;;  %v132_v36 = vpop.permute.xlu0 %131  ;;  %v184_v37 = vadd.f32 %v183_v29, %v182_v21  ;;  %v189_v42 = vadd.f32 %v188_v32, %v187_v7 }
 0x117   :  { %v200_v43 = vrot.slane %v199_v34, 4  ;;  %v798_v44 = vmul.f32 %v628_v17, %v128_v35  ;;  %v800_v45 = vmul.f32 %v629_v19, %v132_v36  ;;  %v195_v47 = vrot.slane %v194_v33, 2 }
 0x118   :  { %v230_v48 = vmul.f32 %v184_v37, %v774_v41  ;;  %v229_v49 = vmul.f32 %v184_v37, %v772_v40  ;;  %v190_v50 = vrot.slane %v189_v42, 1 }
 0x119   :  { %v201_v53 = vadd.f32 %v200_v43, %v199_v34  ;;  %v206_v54 = vadd.f32 %v800_v45, %v798_v44  ;;  %v196_v55 = vadd.f32 %v195_v47, %v194_v33 }
 0x11a   :  { %249 = vadd.xlane.f32.xlu1 %v230_v48  ;;  %247 = vadd.xlane.f32.xlu0 %v229_v49  ;;  %v139_v56 = vpop.permute.xlu1 %138  ;;  %v143_v57 = vpop.permute.xlu0 %142  ;;  %v191_v58 = vadd.f32 %v190_v50, %v189_v42 }
 0x11b   :  { %v207_v61 = vrot.slane %v206_v54, 4  ;;  %v806_v62 = vmul.f32 %v632_v38, %v139_v56  ;;  %v808_v1 = vmul.f32 %v633_v39, %v143_v57  ;;  %v197_v2 = vrot.slane %v196_v55, 1 }
 0x11c   :  { %v232_v6 = vmul.f32 %v191_v58, %v780_v52  ;;  %v231_v7 = vmul.f32 %v191_v58, %v778_v51  ;;  %v202_v9 = vrot.slane %v201_v53, 2 }
 0x11d   :  { %v208_v11 = vadd.f32 %v207_v61, %v206_v54  ;;  %v213_v13 = vadd.f32 %v808_v1, %v806_v62  ;;  %v198_v15 = vadd.f32 %v197_v2, %v196_v55 }
 0x11e   :  { %253 = vadd.xlane.f32.xlu1 %v232_v6  ;;  %251 = vadd.xlane.f32.xlu0 %v231_v7  ;;  %v150_v17 = vpop.permute.xlu1 %149  ;;  %v154_v19 = vpop.permute.xlu0 %153  ;;  %v203_v21 = vadd.f32 %v202_v9, %v201_v53 }
 0x11f   :  { %v214_v23 = vrot.slane %v213_v13, 4  ;;  %v814_v26 = vmul.f32 %v636_v59, %v150_v17  ;;  %v816_v27 = vmul.f32 %v637_v60, %v154_v19  ;;  %v234_v28 = vmul.f32 %v198_v15, %v786_v0 }
 0x120   :  { %v233_v29 = vmul.f32 %v198_v15, %v784_v63  ;;  %v204_v32 = vrot.slane %v203_v21, 1  ;;  %v209_v33 = vrot.slane %v208_v11, 2 }
 0x121   :  { %v215_v34 = vadd.f32 %v214_v23, %v213_v13  ;;  %v220_v35 = vadd.f32 %v816_v27, %v814_v26  ;;  %v312_v23 = vadd.s32 4294967288, %v729_v4 }
 0x122   :  { %257 = vadd.xlane.f32.xlu1 %v234_v28  ;;  %255 = vadd.xlane.f32.xlu0 %v233_v29  ;;  %v205_v36 = vadd.f32 %v204_v32, %v203_v21  ;;  %v210_v37 = vadd.f32 %v209_v33, %v208_v11 }
 0x123   :  { %v221_v38 = vrot.slane %v220_v35, 4  ;;  %v216_v39 = vrot.slane %v215_v34, 2 }
 0x124   :  { %v236_v42 = vmul.f32 %v205_v36, %v792_v25  ;;  %v235_v43 = vmul.f32 %v205_v36, %v790_v24  ;;  %v211_v46 = vrot.slane %v210_v37, 1 }
 0x125   :  { %v222_v47 = vadd.f32 %v221_v38, %v220_v35  ;;  %v217_v48 = vadd.f32 %v216_v39, %v215_v34  ;;  %v310_v34 = vsub.s32 %v729_v4, %v727_v3  ;;  %v315_v35 = vsub.s32 %v312_v23, %v727_v3 }
 0x126   :  { %261 = vadd.xlane.f32.xlu1 %v236_v42  ;;  %259 = vadd.xlane.f32.xlu0 %v235_v43  ;;  %v212_v49 = vadd.f32 %v211_v46, %v210_v37 }
 0x127   :  { %v218_v50 = vrot.slane %v217_v48, 1  ;;  %v223_v53 = vrot.slane %v222_v47, 2 }
 0x128   :  { %v238_v54 = vmul.f32 %v212_v49, %v800_v45  ;;  %v237_v55 = vmul.f32 %v212_v49, %v798_v44 }
 0x129   :  { %v219_v56 = vadd.f32 %v218_v50, %v217_v48  ;;  %v224_v57 = vadd.f32 %v223_v53, %v222_v47 }
 0x12a   :  { %265 = vadd.xlane.f32.xlu1 %v238_v54  ;;  %263 = vadd.xlane.f32.xlu0 %v237_v55 }
 0x12b   :  { %v240_v58 = vmul.f32 %v219_v56, %v808_v1  ;;  %v239_v59 = vmul.f32 %v219_v56, %v806_v62  ;;  %v225_v60 = vrot.slane %v224_v57, 1 }
 0x12d   :  { %v226_v61 = vadd.f32 %v225_v60, %v224_v57 }
 0x12e   :  { %269 = vadd.xlane.f32.xlu1 %v240_v58  ;;  %267 = vadd.xlane.f32.xlu0 %v239_v59 }
 0x12f   :  { %v242_v2 = vmul.f32 %v226_v61, %v816_v27  ;;  %v241_v6 = vmul.f32 %v226_v61, %v814_v26 }
 0x132   :  { %273 = vadd.xlane.f32.xlu1 %v242_v2  ;;  %271 = vadd.xlane.f32.xlu0 %v241_v6 }
 0x19e   :  { %v246_v7 = vpop.xlane.xlu0 %245 }
 0x19f   :  { %v244_v9 = vpop.xlane.xlu1 %243  ;;  %v276_v39 = vmul.f32 0.03125, %v246_v7 }
 0x1a0   :  { %v275_v38 = vmul.f32 0.03125, %v244_v9 }
 0x1a1   :  { %v316_v58 = vrot.slane %v276_v39, %v315_v35 }
 0x1a2   :  { %v311_v4 = vrot.slane %v275_v38, %v310_v34 }
 0x1a3   :  { %v250_v11 = vpop.xlane.xlu1 %249  ;;  %v248_v13 = vpop.xlane.xlu0 %247 }
 0x1a4   :  { %v278_v28 = vmul.f32 0.03125, %v250_v11  ;;  %v277_v29 = vmul.f32 0.03125, %v248_v13 }
 0x1a6   :  { %v326_v46 = vrot.slane %v278_v28, %v315_v35  ;;  %v322_v47 = vrot.slane %v277_v29, %v310_v34 }
 0x1a7   :  { %v254_v15 = vpop.xlane.xlu1 %253  ;;  %v252_v17 = vpop.xlane.xlu0 %251 }
 0x1a8   :  { %v280_v36 = vmul.f32 0.03125, %v254_v15  ;;  %v279_v37 = vmul.f32 0.03125, %v252_v17  ;;  %v327_v61 = vsel %vm317_vm1, %v326_v46, %v322_v47 }
 0x1aa   :  { %v335_v56 = vrot.slane %v280_v36, %v315_v35  ;;  %v331_v57 = vrot.slane %v279_v37, %v310_v34 }
 0x1ab   :  { %v258_v19 = vpop.xlane.xlu1 %257  ;;  %v256_v21 = vpop.xlane.xlu0 %255 }
 0x1ac   :  { %v282_v42 = vmul.f32 0.03125, %v258_v19  ;;  %v281_v43 = vmul.f32 0.03125, %v256_v21  ;;  %v336_v19 = vsel %vm317_vm1, %v335_v56, %v331_v57  ;;  %v318_v21 = vsel %vm317_vm1, %v316_v58, %v311_v4 }
 0x1ae   :  { %v344_v59 = vrot.slane %v282_v42, %v315_v35  ;;  %v340_v60 = vrot.slane %v281_v43, %v310_v34 }
 0x1af   :  { %v262_v32 = vpop.xlane.xlu1 %261  ;;  %v260_v33 = vpop.xlane.xlu0 %259 }
 0x1b0   :  { %v284_v48 = vmul.f32 0.03125, %v262_v32  ;;  %v283_v49 = vmul.f32 0.03125, %v260_v33  ;;  %v345_v23 = vsel %vm317_vm1, %v344_v59, %v340_v60  ;;  %v383_v32 = vsel %vm382_vm2, %v327_v61, %v318_v21 }
 0x1b1   :  { %v385_v38 = vsel %vm384_vm3, %v336_v19, %v383_v32 }
 0x1b2   :  { %v353_v2 = vrot.slane %v284_v48, %v315_v35  ;;  %v349_v6 = vrot.slane %v283_v49, %v310_v34  ;;  %v387_v46 = vsel %vm386_vm4, %v345_v23, %v385_v38 }
 0x1b3   :  { %v266_v50 = vpop.xlane.xlu1 %265  ;;  %v264_v53 = vpop.xlane.xlu0 %263 }
 0x1b4   :  { %v286_v54 = vmul.f32 0.03125, %v266_v50  ;;  %v285_v55 = vmul.f32 0.03125, %v264_v53  ;;  %v354_v33 = vsel %vm317_vm1, %v353_v2, %v349_v6 }
 0x1b5   :  { %v389_v50 = vsel %vm388_vm5, %v354_v33, %v387_v46 }
 0x1b6   :  { %v362_v11 = vrot.slane %v286_v54, %v315_v35  ;;  %v358_v13 = vrot.slane %v285_v55, %v310_v34 }
 0x1b7   :  { %v270_v7 = vpop.xlane.xlu1 %269  ;;  %v268_v9 = vpop.xlane.xlu0 %267 }
 0x1b8   :  { %v288_v15 = vmul.f32 0.03125, %v270_v7  ;;  %v287_v17 = vmul.f32 0.03125, %v268_v9  ;;  %v363_v39 = vsel %vm317_vm1, %v362_v11, %v358_v13 }
 0x1b9   :  { %v391_v53 = vsel %vm390_vm6, %v363_v39, %v389_v50 }
 0x1ba   :  { %v371_v28 = vrot.slane %v288_v15, %v315_v35  ;;  %v367_v29 = vrot.slane %v287_v17, %v310_v34 }
 0x1bb   :  { %v274_v36 = vpop.xlane.xlu1 %273  ;;  %v272_v37 = vpop.xlane.xlu0 %271 }
 0x1bc   :  { %v290_v42 = vmul.f32 0.03125, %v274_v36  ;;  %v289_v43 = vmul.f32 0.03125, %v272_v37  ;;  %v372_v47 = vsel %vm317_vm1, %v371_v28, %v367_v29 }
 0x1bd   :  { %v393_v55 = vsel %vm392_vm7, %v372_v47, %v391_v53 }
 0x1be   :  { %v380_v48 = vrot.slane %v290_v42, %v315_v35  ;;  %v376_v49 = vrot.slane %v289_v43, %v310_v34 }
 0x1c0   :  { %v381_v54 = vsel %vm317_vm1, %v380_v48, %v376_v49 }
 0x1c1   :  { %v395_v56 = vsel %vm394_vm8, %v381_v54, %v393_v55 }
 0x1c2   :  { %v397_v57 = vsel %vm291_vm10, %v395_v56, -1e+30 }
 0x1c3   :  { %v399_v4 = vsel %vm398_vm9, %v397_v57, -inf }
 0x1c4   :  { %400 = vmax.xlane.f32.xlu0 %v399_v4 }
 0x24d   :  { %v401_v58 = vpop.xlane.xlu0 %400 }
 0x24e   :  { %v402_v35 = vsub.f32 %v397_v57, %v401_v58 }
 0x250   :  { %v403_v34 = vmul.f32 1.442695, %v402_v35 }
 0x252   :  { %652 = vpow2.f32 %v403_v34 }
 0x25f   :  { %v653_v59 = vpop.eup %652 }
 0x260   :  { %v405_v60 = vmul.f32 %v653_v59, %v733_v8 }
 0x262   :  { %v406_v61 = vsel %vm398_vm9, %v405_v60, 0.0 }
 0x263   :  { %407 = vadd.xlane.f32.xlu1 %v406_v61 }
 0x2ec   :  { %v408_v2 = vpop.xlane.xlu1 %407 }
 0x2ed   :  { %vm409_vm11 = vcmp.gt.f32.partialorder %v408_v2, 0.0 }
 0x2ee   :  { %v410_v6 = vsel %vm409_vm11, %v408_v2, 1.0 }
 0x2ef   :  { %654 = vrcp.f32 %v410_v6 }
 0x2fc   :  { %v655_v7 = vpop.eup %654 }
 0x2fd   :  { %v412_v9 = vmul.f32 %v655_v7, %v405_v60 }
 0x2ff   :  { %v416_v11 = vrot.slane %v412_v9, %v69_v5  ;;  %v427_v13 = vrot.slane %v412_v9, %v80_v10  ;;  %v438_v8 = vrot.slane %v412_v9, %v91_v12  ;;  %v449_v15 = vrot.slane %v412_v9, %v102_v14 }
 0x300   :  { %v460_v5 = vrot.slane %v412_v9, %v113_v16  ;;  %v471_v10 = vrot.slane %v412_v9, %v124_v18  ;;  %v482_v12 = vrot.slane %v412_v9, %v135_v20  ;;  %v493_v14 = vrot.slane %v412_v9, %v146_v22 }
 0x301   :  { %422 = vbcast.lane.b32.xlu1 %v416_v11, 264  ;;  %418 = vbcast.lane.b32.xlu0 %v416_v11, 256 }
 0x305   :  { %429 = vbcast.lane.b32.xlu1 %v427_v13, 256  ;;  %433 = vbcast.lane.b32.xlu0 %v427_v13, 264 }
 0x309   :  { %440 = vbcast.lane.b32.xlu1 %v438_v8, 256  ;;  %444 = vbcast.lane.b32.xlu0 %v438_v8, 264 }
 0x30d   :  { %451 = vbcast.lane.b32.xlu1 %v449_v15, 256  ;;  %455 = vbcast.lane.b32.xlu0 %v449_v15, 264 }
 0x311   :  { %462 = vbcast.lane.b32.xlu1 %v460_v5, 256  ;;  %466 = vbcast.lane.b32.xlu0 %v460_v5, 264 }
 0x315   :  { %473 = vbcast.lane.b32.xlu1 %v471_v10, 256  ;;  %477 = vbcast.lane.b32.xlu0 %v471_v10, 264 }
 0x319   :  { %484 = vbcast.lane.b32.xlu1 %v482_v12, 256  ;;  %488 = vbcast.lane.b32.xlu0 %v482_v12, 264 }
 0x31d   :  { %495 = vbcast.lane.b32.xlu1 %v493_v14, 256  ;;  %499 = vbcast.lane.b32.xlu0 %v493_v14, 264 }
 0x373   :  { %v423_v17 = vpop.permute.xlu1 %422  ;;  %v419_v19 = vpop.permute.xlu0 %418 }
 0x374   :  { %v502_v28 = vmul.f32 %v423_v17, %v766_v30  ;;  %v501_v29 = vmul.f32 %v419_v19, %v768_v31 }
 0x376   :  { %v517_v36 = vadd.f32 %v502_v28, %v501_v29 }
 0x377   :  { %v430_v16 = vpop.permute.xlu1 %429  ;;  %v434_v21 = vpop.permute.xlu0 %433 }
 0x378   :  { %v503_v23 = vmul.f32 %v430_v16, %v772_v40  ;;  %v504_v18 = vmul.f32 %v434_v21, %v774_v41  ;;  %v518_v43 = vrot.slane %v517_v36, 4 }
 0x37a   :  { %v524_v22 = vadd.f32 %v504_v18, %v503_v23  ;;  %v519_v53 = vadd.f32 %v518_v43, %v517_v36 }
 0x37b   :  { %v441_v20 = vpop.permute.xlu1 %440  ;;  %v445_v32 = vpop.permute.xlu0 %444 }
 0x37c   :  { %v505_v33 = vmul.f32 %v441_v20, %v778_v51  ;;  %v506_v3 = vmul.f32 %v445_v32, %v780_v52  ;;  %v525_v41 = vrot.slane %v524_v22, 4  ;;  %v520_v34 = vrot.slane %v519_v53, 2 }
 0x37e   :  { %v531_v37 = vadd.f32 %v506_v3, %v505_v33  ;;  %v526_v49 = vadd.f32 %v525_v41, %v524_v22  ;;  %v521_v8 = vadd.f32 %v520_v34, %v519_v53 }
 0x37f   :  { %v452_v38 = vpop.permute.xlu1 %451  ;;  %v456_v39 = vpop.permute.xlu0 %455 }
 0x380   :  { %v507_v42 = vmul.f32 %v452_v38, %v784_v63  ;;  %v508_v40 = vmul.f32 %v456_v39, %v786_v0  ;;  %v532_v30 = vrot.slane %v531_v37, 4  ;;  %v527_v58 = vrot.slane %v526_v49, 2 }
 0x381   :  { %v522_v28 = vrot.slane %v521_v8, 1 }
 0x382   :  { %v538_v46 = vadd.f32 %v508_v40, %v507_v42  ;;  %v533_v54 = vadd.f32 %v532_v30, %v531_v37  ;;  %v528_v11 = vadd.f32 %v527_v58, %v526_v49 }
 0x383   :  { %v463_v31 = vpop.permute.xlu1 %462  ;;  %v467_v47 = vpop.permute.xlu0 %466 }
 0x384   :  { %v509_v48 = vmul.f32 %v463_v31, %v790_v24  ;;  %v510_v51 = vmul.f32 %v467_v47, %v792_v25  ;;  %v539_v52 = vrot.slane %v538_v46, 4  ;;  %v534_v59 = vrot.slane %v533_v54, 2 }
 0x386   :  { %v545_v50 = vadd.f32 %v510_v51, %v509_v48  ;;  %v540_v63 = vadd.f32 %v539_v52, %v538_v46 }
 0x387   :  { %v474_v55 = vpop.permute.xlu1 %473  ;;  %v478_v56 = vpop.permute.xlu0 %477 }
 0x388   :  { %v546_v57 = vrot.slane %v545_v50, 4  ;;  %v511_v0 = vmul.f32 %v474_v55, %v798_v44  ;;  %v512_v4 = vmul.f32 %v478_v56, %v800_v45  ;;  %v541_v61 = vrot.slane %v540_v63, 2 }
 0x389   :  { %v535_v44 = vadd.f32 %v534_v59, %v533_v54 }
 0x38a   :  { %v547_v35 = vadd.f32 %v546_v57, %v545_v50  ;;  %v552_v24 = vadd.f32 %v512_v4, %v511_v0  ;;  %v542_v10 = vadd.f32 %v541_v61, %v540_v63 }
 0x38b   :  { %v485_v60 = vpop.permute.xlu1 %484  ;;  %v489_v25 = vpop.permute.xlu0 %488  ;;  %v536_v23 = vrot.slane %v535_v44, 1 }
 0x38c   :  { %v513_v2 = vmul.f32 %v485_v60, %v806_v62  ;;  %v514_v6 = vmul.f32 %v489_v25, %v808_v1  ;;  %v548_v7 = vrot.slane %v547_v35, 2  ;;  %v553_v9 = vrot.slane %v552_v24, 4 }
 0x38d   :  { %v529_v62 = vrot.slane %v528_v11, 1  ;;  %v543_v29 = vrot.slane %v542_v10, 1  ;;  %v537_v38 = vadd.f32 %v536_v23, %v535_v44 }
 0x38e   :  { %v559_v13 = vadd.f32 %v514_v6, %v513_v2  ;;  %v554_v15 = vadd.f32 %v553_v9, %v552_v24  ;;  %v549_v19 = vadd.f32 %v548_v7, %v547_v35 }
 0x38f   :  { %v496_v45 = vpop.permute.xlu1 %495  ;;  %v500_v5 = vpop.permute.xlu0 %499  ;;  %v530_v3 = vadd.f32 %v529_v62, %v528_v11  ;;  %v544_v39 = vadd.f32 %v543_v29, %v542_v10 }
 0x390   :  { %v560_v12 = vrot.slane %v559_v13, 4  ;;  %v515_v14 = vmul.f32 %v496_v45, %v814_v26  ;;  %v516_v17 = vmul.f32 %v500_v5, %v816_v27  ;;  %v555_v16 = vrot.slane %v554_v15, 2 }
 0x391   :  { %v550_v33 = vrot.slane %v549_v19, 1  ;;  %v523_v26 = vadd.f32 %v522_v28, %v521_v8 }
 0x392   :  { %v561_v21 = vadd.f32 %v560_v12, %v559_v13  ;;  %v566_v1 = vadd.f32 %v516_v17, %v515_v14  ;;  %v556_v18 = vadd.f32 %v555_v16, %v554_v15 }
 0x393   :  { %v551_v40 = vadd.f32 %v550_v33, %v549_v19  ;;  %v581_v41 = vsel %vm382_vm2, %v530_v3, %v523_v26 }
 0x394   :  { %v562_v20 = vrot.slane %v561_v21, 2  ;;  %v567_v32 = vrot.slane %v566_v1, 4  ;;  %v557_v22 = vrot.slane %v556_v18, 1  ;;  %v582_v46 = vsel %vm384_vm3, %v537_v38, %v581_v41 }
 0x395   :  { %v583_v48 = vsel %vm386_vm4, %v544_v39, %v582_v46 }
 0x396   :  { %v563_v36 = vadd.f32 %v562_v20, %v561_v21  ;;  %v568_v37 = vadd.f32 %v567_v32, %v566_v1  ;;  %v558_v43 = vadd.f32 %v557_v22, %v556_v18  ;;  %v584_v51 = vsel %vm388_vm5, %v551_v40, %v583_v48 }
 0x398   :  { %v564_v27 = vrot.slane %v563_v36, 1  ;;  %v569_v42 = vrot.slane %v568_v37, 2  ;;  %v585_v49 = vsel %vm390_vm6, %v558_v43, %v584_v51 }
 0x39a   :  { %v570_v30 = vadd.f32 %v569_v42, %v568_v37  ;;  %v565_v31 = vadd.f32 %v564_v27, %v563_v36 }
 0x39c   :  { %v571_v47 = vrot.slane %v570_v30, 1  ;;  %v586_v50 = vsel %vm392_vm7, %v565_v31, %v585_v49 }
 0x39e   :  { %v572_v52 = vadd.f32 %v571_v47, %v570_v30 }
 0x3a0   :  { %v587_v53 = vsel %vm394_vm8, %v572_v52, %v586_v50 }
 0x3a1   :  { %589 = vst [vmem:[#allocation5] sm:$0xff] %v587_v53 }
 0x3a2   :  { %687 = shalt.err (!%p684_p9)
}
 0x3a3   :  { %599 = dma.vmem_to_hbm [thread:$0]  %s597_s1, 128, %s895_s2, [#allocation4]  }
 0x3a4   :  { %698 = dma.done.wait [#allocation4], 128  }
 0x3a5   :  { %699 = vsyncadd [#allocation4], 4294967168 }
 0x3a6   :  { %603 = vsyncpa [#allocation3], 1 }
 0x3a7   :  { %604 = vsyncpa [#allocation4], 1 }

</bundles_post_ra>
